<compile_context>
chip_gen: v7x
topology: tpu7x:2x2x1
jax: 0.10.0
libtpu: 0.0.40
codegen_flags: <defaults>
</compile_context>

<pallas_src>
import functools

import jax
import jax.numpy as jnp
from jax import lax
from jax.experimental import pallas as pl
from jax.experimental.pallas import tpu as pltpu

SMOOTH_NR = 1e-5
SMOOTH_DR = 1e-5

# VMEM budget (bytes) reserved for the double-buffered input blocks; keeps us
# comfortably inside the 32 MiB scoped-VMEM limit that is safe across
# v5e / v6e / v7x even for larger channel counts.
_INPUT_VMEM_BUDGET = 12 * 1024 * 1024
_TSUB_CAP = 1024      # hard cap on sublane rows per spatial tile


def _pick_tsub(n_ch, s128):
    """Sublane rows per spatial tile: as big as the VMEM budget allows."""
    # 2 pipeline buffers * 128 lanes * 4 B * (C pred slabs + 1 label slab)
    bytes_per_row = 2 * 128 * 4 * (n_ch + 1)
    tmax = (_INPUT_VMEM_BUDGET // bytes_per_row) // 8 * 8
    tmax = max(8, min(tmax, _TSUB_CAP))
    return min(tmax, s128)


def _dice_ce_kernel(y_pred_ref, y_true_ref, out_ref,
                    inter_acc, ground_acc, pred_acc, ce_acc,
                    *, n_ch, tsub, s_actual, padded):
    s = pl.program_id(1)

    @pl.when(s == 0)
    def _():
        inter_acc[...] = jnp.zeros_like(inter_acc)
        ground_acc[...] = jnp.zeros_like(ground_acc)
        pred_acc[...] = jnp.zeros_like(pred_acc)
        ce_acc[...] = jnp.zeros_like(ce_acc)

    x = y_pred_ref[0].astype(jnp.float32)    # (C, tsub, 128) logits
    t = y_true_ref[0]                        # (1, tsub, 128) int32 labels

    c_iota = lax.broadcasted_iota(jnp.int32, (n_ch, tsub, 128), 0)
    if padded:
        # mask positions past the real spatial extent (only generated when S is
        # not a multiple of the tile size).
        sub_i = lax.broadcasted_iota(jnp.int32, (1, tsub, 128), 1)
        lane_i = lax.broadcasted_iota(jnp.int32, (1, tsub, 128), 2)
        sp_idx = s * (tsub * 128) + sub_i * 128 + lane_i
        valid = (sp_idx < s_actual).astype(jnp.float32)        # (1, tsub, 128)
        onehot = jnp.where(c_iota == t, valid, 0.0)            # one-hot * mask
    else:
        onehot = (c_iota == t).astype(jnp.float32)             # (C, tsub, 128)

    # numerically-stable softmax over the channel (leading) axis. Channel
    # max/sum are elementwise VALU ops over C dense slabs; the divide is one
    # (1, tsub, 128) reciprocal followed by a multiply.
    m = jnp.max(x, axis=0, keepdims=True)                       # (1, tsub, 128)
    e = jnp.exp(x - m)                                          # (C, tsub, 128)
    sum_e = jnp.sum(e, axis=0, keepdims=True)                   # (1, tsub, 128)
    inv = pl.reciprocal(sum_e, approx=False)                    # exact (1e-5 tol)
    p = e * inv                                                 # softmax

    # ---- cross entropy without materializing the full (C, tile) log-softmax:
    #      -log p_true = m + log(sum_e) - x_true
    x_true = jnp.sum(onehot * x, axis=0, keepdims=True)         # (1, tsub, 128)
    ce_pix = m + jnp.log(sum_e) - x_true
    if padded:
        ce_pix = ce_pix * valid
    ce_acc[...] += jnp.sum(ce_pix, axis=1)                      # (1, 128)

    # ---- dice partials: per-class lane-partial sums over this spatial tile ---
    p_valid = p * valid if padded else p
    inter_acc[...] += jnp.sum(onehot * p, axis=1)               # (C, 128)
    ground_acc[...] += jnp.sum(onehot, axis=1)                  # (C, 128)
    pred_acc[...] += jnp.sum(p_valid, axis=1)                   # (C, 128)

    # ---- finalize once, on the last spatial tile of this batch element ----
    @pl.when(s == pl.num_programs(1) - 1)
    def _():
        inter_c = jnp.sum(inter_acc[...], axis=1, keepdims=True)    # (C, 1)
        ground_c = jnp.sum(ground_acc[...], axis=1, keepdims=True)  # (C, 1)
        pred_c = jnp.sum(pred_acc[...], axis=1, keepdims=True)      # (C, 1)
        f = 1.0 - (2.0 * inter_c + SMOOTH_NR) / (ground_c + pred_c + SMOOTH_DR)
        dice_n = jnp.sum(f, axis=0, keepdims=True)                  # (1, 1)
        ce_n = jnp.sum(ce_acc[...], axis=1, keepdims=True)          # (1, 1)
        lane = lax.broadcasted_iota(jnp.int32, (1, 128), 1)
        out_ref[0] = (jnp.where(lane == 0, dice_n, 0.0)
                      + jnp.where(lane == 1, ce_n, 0.0))


def dice_ce_loss(y_pred, y_true):
    """y_pred: (N, C, H, W) logits; y_true: (N, 1, H, W) class indices."""
    N, C, H, W = y_pred.shape
    S = H * W

    s128 = pl.cdiv(S, 128)              # 128-lane groups along the spatial axis
    tsub = _pick_tsub(C, s128)          # sublane rows per channel per tile
    n_s_tiles = pl.cdiv(s128, tsub)
    s_pad = n_s_tiles * tsub * 128
    padded = s_pad != S

    # keep y_pred in its native dtype (e.g. bf16) — cast happens in-kernel;
    # labels travel as int32, not float32 (halves / quarters HBM bytes).
    yp = y_pred.reshape(N, C, S)
    yt = y_true.reshape(N, 1, S).astype(jnp.int32)
    if padded:
        yp = jnp.pad(yp, ((0, 0), (0, 0), (0, s_pad - S)))
        yt = jnp.pad(yt, ((0, 0), (0, 0), (0, s_pad - S)))
    yp = yp.reshape(N, C, s_pad // 128, 128)
    yt = yt.reshape(N, 1, s_pad // 128, 128)

    kernel = functools.partial(_dice_ce_kernel, n_ch=C, tsub=tsub,
                               s_actual=S, padded=padded)

    out = pl.pallas_call(
        kernel,
        out_shape=jax.ShapeDtypeStruct((N, 1, 128), jnp.float32),
        grid_spec=pltpu.PrefetchScalarGridSpec(
            num_scalar_prefetch=0,
            grid=(N, n_s_tiles),
            in_specs=[
                pl.BlockSpec((1, C, tsub, 128), lambda n, s: (n, 0, s, 0)),
                pl.BlockSpec((1, 1, tsub, 128), lambda n, s: (n, 0, s, 0)),
            ],
            out_specs=pl.BlockSpec((1, 1, 128), lambda n, s: (n, 0, 0)),
            scratch_shapes=[
                pltpu.VMEM((C, 128), jnp.float32),   # intersection partials
                pltpu.VMEM((C, 128), jnp.float32),   # ground_o partials
                pltpu.VMEM((C, 128), jnp.float32),   # pred_o partials
                pltpu.VMEM((1, 128), jnp.float32),   # cross-entropy partials
            ],
        ),
        compiler_params=pltpu.CompilerParams(
            # batch axis shardable across TensorCores (v7x megacore); spatial
            # axis is the sequential reduction axis (accumulators in scratch).
            dimension_semantics=("parallel", "arbitrary"),
            vmem_limit_bytes=32 * 1024 * 1024,
        ),
    )(yp, yt)

    dice_sum = jnp.sum(out[:, 0, 0])
    ce_sum = jnp.sum(out[:, 0, 1])
    return dice_sum / (N * C) + ce_sum / (N * S)


def _reference(y_pred, y_true):
    """Pure-JAX reference mirroring the PyTorch DiceCELoss module."""
    N, C, H, W = y_pred.shape
    labels = y_true.reshape(N, H, W).astype(jnp.int32)
    logp = jax.nn.log_softmax(y_pred.astype(jnp.float32), axis=1)
    ce = -jnp.mean(jnp.take_along_axis(logp, labels[:, None], axis=1))
    onehot = jax.nn.one_hot(labels, C, axis=1, dtype=jnp.float32)   # (N,C,H,W)
    p = jax.nn.softmax(y_pred.astype(jnp.float32), axis=1)
    inter = jnp.sum(onehot * p, axis=(2, 3))
    denom = jnp.sum(onehot, axis=(2, 3)) + jnp.sum(p, axis=(2, 3))
    dice = jnp.mean(1.0 - (2.0 * inter + SMOOTH_NR) / (denom + SMOOTH_DR))
    return dice + ce


if __name__ == "__main__":
    key = jax.random.PRNGKey(0)
    k1, k2 = jax.random.split(key)
    N, C, H, W = 2, 4, 16, 16
    y_pred = jax.random.normal(k1, (N, C, H, W), dtype=jnp.float32)
    y_true = jax.random.randint(k2, (N, 1, H, W), 0, C).astype(jnp.float32)

    loss = jax.block_until_ready(dice_ce_loss(y_pred, y_true))

    ref = _reference(y_pred, y_true)
    assert jnp.allclose(loss, ref, rtol=1e-5, atol=1e-5), (loss, ref)
    print("KERNEL_OK")
</pallas_src>

<mosaic_0001>
module attributes {stable_mosaic.version = 11 : i64} {
  func.func @_dice_ce_kernel(%arg0: i32, %arg1: i32, %arg2: memref<1x4x2x128xf32, #tpu.memory_space<vmem>>, %arg3: memref<1x1x2x128xi32, #tpu.memory_space<vmem>>, %arg4: memref<1x1x128xf32, #tpu.memory_space<vmem>>, %arg5: memref<4x128xf32, #tpu.memory_space<vmem>>, %arg6: memref<4x128xf32, #tpu.memory_space<vmem>>, %arg7: memref<4x128xf32, #tpu.memory_space<vmem>>, %arg8: memref<1x128xf32, #tpu.memory_space<vmem>>) attributes {dimension_semantics = [#tpu.dimension_semantics<parallel>, #tpu.dimension_semantics<arbitrary>], iteration_bounds = array<i64: 2, 1>, scalar_prefetch = 0 : i64, scratch_operands = 4 : i64, tpu.core_type = #tpu.core_type<tc>, window_params = [{transform_indices = @transform_0, window_bounds = array<i64: 1, 4, 2, 128>}, {transform_indices = @transform_1, window_bounds = array<i64: 1, 1, 2, 128>}, {transform_indices = @transform_2, window_bounds = array<i64: 1, 1, 128>}]} {
    %c0_i32 = arith.constant 0 : i32
    %0 = arith.cmpi eq, %arg1, %c0_i32 : i32
    %1 = arith.extui %0 : i1 to i32
    %c0_i32_0 = arith.constant 0 : i32
    %2 = arith.cmpi ne, %1, %c0_i32_0 : i32
    scf.if %2 {
      %cst_32 = arith.constant 0.000000e+00 : f32
      %48 = vector.broadcast %cst_32 : f32 to vector<4x128xf32>
      %c0_33 = arith.constant 0 : index
      %c0_34 = arith.constant 0 : index
      %49 = vector.load %arg5[%c0_33, %c0_34] : memref<4x128xf32, #tpu.memory_space<vmem>>, vector<4x128xf32>
      tpu.vector_store %arg5[%c0_33, %c0_34], %48 {strides = array<i32>} : memref<4x128xf32, #tpu.memory_space<vmem>>, vector<4x128xf32>,
      %cst_35 = arith.constant 0.000000e+00 : f32
      %50 = vector.broadcast %cst_35 : f32 to vector<4x128xf32>
      %c0_36 = arith.constant 0 : index
      %c0_37 = arith.constant 0 : index
      %51 = vector.load %arg6[%c0_36, %c0_37] : memref<4x128xf32, #tpu.memory_space<vmem>>, vector<4x128xf32>
      tpu.vector_store %arg6[%c0_36, %c0_37], %50 {strides = array<i32>} : memref<4x128xf32, #tpu.memory_space<vmem>>, vector<4x128xf32>,
      %cst_38 = arith.constant 0.000000e+00 : f32
      %52 = vector.broadcast %cst_38 : f32 to vector<4x128xf32>
      %c0_39 = arith.constant 0 : index
      %c0_40 = arith.constant 0 : index
      %53 = vector.load %arg7[%c0_39, %c0_40] : memref<4x128xf32, #tpu.memory_space<vmem>>, vector<4x128xf32>
      tpu.vector_store %arg7[%c0_39, %c0_40], %52 {strides = array<i32>} : memref<4x128xf32, #tpu.memory_space<vmem>>, vector<4x128xf32>,
      %cst_41 = arith.constant 0.000000e+00 : f32
      %54 = vector.broadcast %cst_41 : f32 to vector<1x128xf32>
      %c0_42 = arith.constant 0 : index
      %c0_43 = arith.constant 0 : index
      %55 = vector.load %arg8[%c0_42, %c0_43] : memref<1x128xf32, #tpu.memory_space<vmem>>, vector<1x128xf32>
      tpu.vector_store %arg8[%c0_42, %c0_43], %54 {strides = array<i32>} : memref<1x128xf32, #tpu.memory_space<vmem>>, vector<1x128xf32>,
    } else {
    }
    %c0 = arith.constant 0 : index
    %c0_1 = arith.constant 0 : index
    %c0_2 = arith.constant 0 : index
    %c0_3 = arith.constant 0 : index
    %3 = vector.load %arg2[%c0, %c0_1, %c0_2, %c0_3] : memref<1x4x2x128xf32, #tpu.memory_space<vmem>>, vector<1x4x2x128xf32>
    %4 = vector.shape_cast %3 : vector<1x4x2x128xf32> to vector<4x2x128xf32>
    %c0_4 = arith.constant 0 : index
    %c0_5 = arith.constant 0 : index
    %c0_6 = arith.constant 0 : index
    %c0_7 = arith.constant 0 : index
    %5 = vector.load %arg3[%c0_4, %c0_5, %c0_6, %c0_7] : memref<1x1x2x128xi32, #tpu.memory_space<vmem>>, vector<1x1x2x128xi32>
    %6 = vector.shape_cast %5 : vector<1x1x2x128xi32> to vector<1x2x128xi32>
    %7 = tpu.iota {dimensions = array<i32: 0>} : vector<4x2x128xi32>
    %8 = vector.broadcast %6 : vector<1x2x128xi32> to vector<4x2x128xi32>
    %9 = arith.cmpi eq, %7, %8 : vector<4x2x128xi32>
    %10 = arith.extui %9 : vector<4x2x128xi1> to vector<4x2x128xi32>
    %11 = arith.sitofp %10 : vector<4x2x128xi32> to vector<4x2x128xf32>
    %cst = arith.constant dense<0xFF800000> : vector<2x128xf32>
    %12 = vector.multi_reduction <maximumf>, %4, %cst [0] : vector<4x2x128xf32> to vector<2x128xf32>
    %13 = vector.shape_cast %12 : vector<2x128xf32> to vector<1x2x128xf32>
    %14 = vector.broadcast %13 : vector<1x2x128xf32> to vector<4x2x128xf32>
    %15 = arith.subf %4, %14 : vector<4x2x128xf32>
    %16 = math.exp %15 : vector<4x2x128xf32>
    %cst_8 = arith.constant dense<0.000000e+00> : vector<2x128xf32>
    %17 = vector.multi_reduction <add>, %16, %cst_8 [0] : vector<4x2x128xf32> to vector<2x128xf32>
    %18 = vector.shape_cast %17 : vector<2x128xf32> to vector<1x2x128xf32>
    %19 = tpu.reciprocal %18 : vector<1x2x128xf32> -> vector<1x2x128xf32>
    %20 = vector.broadcast %19 : vector<1x2x128xf32> to vector<4x2x128xf32>
    %21 = arith.mulf %16, %20 : vector<4x2x128xf32>
    %22 = arith.mulf %11, %4 : vector<4x2x128xf32>
    %cst_9 = arith.constant dense<0.000000e+00> : vector<2x128xf32>
    %23 = vector.multi_reduction <add>, %22, %cst_9 [0] : vector<4x2x128xf32> to vector<2x128xf32>
    %24 = vector.shape_cast %23 : vector<2x128xf32> to vector<1x2x128xf32>
    %25 = math.log %18 : vector<1x2x128xf32>
    %26 = arith.addf %13, %25 : vector<1x2x128xf32>
    %27 = arith.subf %26, %24 : vector<1x2x128xf32>
    %c0_10 = arith.constant 0 : index
    %c0_11 = arith.constant 0 : index
    %28 = vector.load %arg8[%c0_10, %c0_11] : memref<1x128xf32, #tpu.memory_space<vmem>>, vector<1x128xf32>
    %cst_12 = arith.constant dense<0.000000e+00> : vector<1x128xf32>
    %29 = vector.multi_reduction <add>, %27, %cst_12 [1] : vector<1x2x128xf32> to vector<1x128xf32>
    %30 = arith.addf %28, %29 : vector<1x128xf32>
    %c0_13 = arith.constant 0 : index
    %c0_14 = arith.constant 0 : index
    %31 = vector.load %arg8[%c0_13, %c0_14] : memref<1x128xf32, #tpu.memory_space<vmem>>, vector<1x128xf32>
    tpu.vector_store %arg8[%c0_13, %c0_14], %30 {strides = array<i32>} : memref<1x128xf32, #tpu.memory_space<vmem>>, vector<1x128xf32>,
    %c0_15 = arith.constant 0 : index
    %c0_16 = arith.constant 0 : index
    %32 = vector.load %arg5[%c0_15, %c0_16] : memref<4x128xf32, #tpu.memory_space<vmem>>, vector<4x128xf32>
    %33 = arith.mulf %11, %21 : vector<4x2x128xf32>
    %cst_17 = arith.constant dense<0.000000e+00> : vector<4x128xf32>
    %34 = vector.multi_reduction <add>, %33, %cst_17 [1] : vector<4x2x128xf32> to vector<4x128xf32>
    %35 = arith.addf %32, %34 : vector<4x128xf32>
    %c0_18 = arith.constant 0 : index
    %c0_19 = arith.constant 0 : index
    %36 = vector.load %arg5[%c0_18, %c0_19] : memref<4x128xf32, #tpu.memory_space<vmem>>, vector<4x128xf32>
    tpu.vector_store %arg5[%c0_18, %c0_19], %35 {strides = array<i32>} : memref<4x128xf32, #tpu.memory_space<vmem>>, vector<4x128xf32>,
    %c0_20 = arith.constant 0 : index
    %c0_21 = arith.constant 0 : index
    %37 = vector.load %arg6[%c0_20, %c0_21] : memref<4x128xf32, #tpu.memory_space<vmem>>, vector<4x128xf32>
    %cst_22 = arith.constant dense<0.000000e+00> : vector<4x128xf32>
    %38 = vector.multi_reduction <add>, %11, %cst_22 [1] : vector<4x2x128xf32> to vector<4x128xf32>
    %39 = arith.addf %37, %38 : vector<4x128xf32>
    %c0_23 = arith.constant 0 : index
    %c0_24 = arith.constant 0 : index
    %40 = vector.load %arg6[%c0_23, %c0_24] : memref<4x128xf32, #tpu.memory_space<vmem>>, vector<4x128xf32>
    tpu.vector_store %arg6[%c0_23, %c0_24], %39 {strides = array<i32>} : memref<4x128xf32, #tpu.memory_space<vmem>>, vector<4x128xf32>,
    %c0_25 = arith.constant 0 : index
    %c0_26 = arith.constant 0 : index
    %41 = vector.load %arg7[%c0_25, %c0_26] : memref<4x128xf32, #tpu.memory_space<vmem>>, vector<4x128xf32>
    %cst_27 = arith.constant dense<0.000000e+00> : vector<4x128xf32>
    %42 = vector.multi_reduction <add>, %21, %cst_27 [1] : vector<4x2x128xf32> to vector<4x128xf32>
    %43 = arith.addf %41, %42 : vector<4x128xf32>
    %c0_28 = arith.constant 0 : index
    %c0_29 = arith.constant 0 : index
    %44 = vector.load %arg7[%c0_28, %c0_29] : memref<4x128xf32, #tpu.memory_space<vmem>>, vector<4x128xf32>
    tpu.vector_store %arg7[%c0_28, %c0_29], %43 {strides = array<i32>} : memref<4x128xf32, #tpu.memory_space<vmem>>, vector<4x128xf32>,
    %c0_i32_30 = arith.constant 0 : i32
    %45 = arith.cmpi eq, %arg1, %c0_i32_30 : i32
    %46 = arith.extui %45 : i1 to i32
    %c0_i32_31 = arith.constant 0 : i32
    %47 = arith.cmpi ne, %46, %c0_i32_31 : i32
    scf.if %47 {
      %c0_32 = arith.constant 0 : index
      %c0_33 = arith.constant 0 : index
      %48 = vector.load %arg5[%c0_32, %c0_33] : memref<4x128xf32, #tpu.memory_space<vmem>>, vector<4x128xf32>
      %cst_34 = arith.constant dense<0.000000e+00> : vector<4xf32>
      %49 = vector.multi_reduction <add>, %48, %cst_34 [1] : vector<4x128xf32> to vector<4xf32>
      %50 = vector.shape_cast %49 : vector<4xf32> to vector<4x1xf32>
      %c0_35 = arith.constant 0 : index
      %c0_36 = arith.constant 0 : index
      %51 = vector.load %arg6[%c0_35, %c0_36] : memref<4x128xf32, #tpu.memory_space<vmem>>, vector<4x128xf32>
      %cst_37 = arith.constant dense<0.000000e+00> : vector<4xf32>
      %52 = vector.multi_reduction <add>, %51, %cst_37 [1] : vector<4x128xf32> to vector<4xf32>
      %53 = vector.shape_cast %52 : vector<4xf32> to vector<4x1xf32>
      %c0_38 = arith.constant 0 : index
      %c0_39 = arith.constant 0 : index
      %54 = vector.load %arg7[%c0_38, %c0_39] : memref<4x128xf32, #tpu.memory_space<vmem>>, vector<4x128xf32>
      %cst_40 = arith.constant dense<0.000000e+00> : vector<4xf32>
      %55 = vector.multi_reduction <add>, %54, %cst_40 [1] : vector<4x128xf32> to vector<4xf32>
      %56 = vector.shape_cast %55 : vector<4xf32> to vector<4x1xf32>
      %cst_41 = arith.constant 2.000000e+00 : f32
      %57 = vector.broadcast %cst_41 : f32 to vector<4x1xf32>
      %58 = arith.mulf %57, %50 : vector<4x1xf32>
      %cst_42 = arith.constant 9.99999974E-6 : f32
      %59 = vector.broadcast %cst_42 : f32 to vector<4x1xf32>
      %60 = arith.addf %58, %59 : vector<4x1xf32>
      %61 = arith.addf %53, %56 : vector<4x1xf32>
      %cst_43 = arith.constant 9.99999974E-6 : f32
      %62 = vector.broadcast %cst_43 : f32 to vector<4x1xf32>
      %63 = arith.addf %61, %62 : vector<4x1xf32>
      %64 = arith.divf %60, %63 : vector<4x1xf32>
      %cst_44 = arith.constant 1.000000e+00 : f32
      %65 = vector.broadcast %cst_44 : f32 to vector<4x1xf32>
      %66 = arith.subf %65, %64 : vector<4x1xf32>
      %cst_45 = arith.constant dense<0.000000e+00> : vector<1xf32>
      %67 = vector.multi_reduction <add>, %66, %cst_45 [0] : vector<4x1xf32> to vector<1xf32>
      %68 = vector.shape_cast %67 : vector<1xf32> to vector<1x1xf32>
      %c0_46 = arith.constant 0 : index
      %c0_47 = arith.constant 0 : index
      %69 = vector.load %arg8[%c0_46, %c0_47] : memref<1x128xf32, #tpu.memory_space<vmem>>, vector<1x128xf32>
      %cst_48 = arith.constant dense<0.000000e+00> : vector<1xf32>
      %70 = vector.multi_reduction <add>, %69, %cst_48 [1] : vector<1x128xf32> to vector<1xf32>
      %71 = vector.shape_cast %70 : vector<1xf32> to vector<1x1xf32>
      %72 = tpu.iota {dimensions = array<i32: 1>} : vector<1x128xi32>
      %c0_i32_49 = arith.constant 0 : i32
      %73 = vector.broadcast %c0_i32_49 : i32 to vector<1x128xi32>
      %74 = arith.cmpi eq, %72, %73 : vector<1x128xi32>
      %cst_50 = arith.constant 0.000000e+00 : f32
      %75 = vector.shape_cast %68 : vector<1x1xf32> to vector<1x1xf32>
      %76 = vector.broadcast %75 : vector<1x1xf32> to vector<1x128xf32>
      %77 = vector.broadcast %cst_50 : f32 to vector<1x128xf32>
      %78 = arith.select %74, %76, %77 : vector<1x128xi1>, vector<1x128xf32>
      %c1_i32 = arith.constant 1 : i32
      %79 = vector.broadcast %c1_i32 : i32 to vector<1x128xi32>
      %80 = arith.cmpi eq, %72, %79 : vector<1x128xi32>
      %cst_51 = arith.constant 0.000000e+00 : f32
      %81 = vector.shape_cast %71 : vector<1x1xf32> to vector<1x1xf32>
      %82 = vector.broadcast %81 : vector<1x1xf32> to vector<1x128xf32>
      %83 = vector.broadcast %cst_51 : f32 to vector<1x128xf32>
      %84 = arith.select %80, %82, %83 : vector<1x128xi1>, vector<1x128xf32>
      %85 = arith.addf %78, %84 : vector<1x128xf32>
      %c0_52 = arith.constant 0 : index
      %c0_53 = arith.constant 0 : index
      %c0_54 = arith.constant 0 : index
      %86 = vector.load %arg4[%c0_52, %c0_53, %c0_54] : memref<1x1x128xf32, #tpu.memory_space<vmem>>, vector<1x1x128xf32>
      %87 = vector.shape_cast %86 : vector<1x1x128xf32> to vector<1x128xf32>
      %88 = vector.shape_cast %85 : vector<1x128xf32> to vector<1x1x128xf32>
      tpu.vector_store %arg4[%c0_52, %c0_53, %c0_54], %88 {strides = array<i32>} : memref<1x1x128xf32, #tpu.memory_space<vmem>>, vector<1x1x128xf32>,
    } else {
    }
    return
  }
  func.func @transform_0(%arg0: i32, %arg1: i32) -> (i32, i32, i32, i32) {
    %c0_i32 = arith.constant 0 : i32
    %c0_i32_0 = arith.constant 0 : i32
    %c0_i32_1 = arith.constant 0 : i32
    return %arg0, %c0_i32, %arg1, %c0_i32_0 : i32, i32, i32, i32
  }
  func.func @transform_1(%arg0: i32, %arg1: i32) -> (i32, i32, i32, i32) {
    %c0_i32 = arith.constant 0 : i32
    %c0_i32_0 = arith.constant 0 : i32
    %c0_i32_1 = arith.constant 0 : i32
    return %arg0, %c0_i32, %arg1, %c0_i32_0 : i32, i32, i32, i32
  }
  func.func @transform_2(%arg0: i32, %arg1: i32) -> (i32, i32, i32) {
    %c0_i32 = arith.constant 0 : i32
    %c0_i32_0 = arith.constant 0 : i32
    %c0_i32_1 = arith.constant 0 : i32
    return %arg0, %c0_i32, %c0_i32_0 : i32, i32, i32
  }
}

</mosaic_0001>

<bundles_post_ra>
// kernel: tpu_custom_call.1
= control target key start
LH: loop header
LB: loop body
LE: loop exit
PB: predicated region body
PF: predicated region fallthrough
CT: control target
= control target key end

     0   :  { %7 = vsyncpa [#allocation7], 0  ;;  %s1155_s0 = inlined_call_operand.hbm [shape: f32[2,4,2,128], index: 0, kind: input, shape index: {}]   ;;  %s1156_s1 = inlined_call_operand.hbm [shape: s32[2,1,2,128], index: 1, kind: input, shape index: {}]   ;;  %s1157_s2 = inlined_call_operand.hbm [shape: f32[2,1,128], index: 2, kind: output, shape index: {}]  }
   0x1   :  { %9 = vsyncpa [#allocation7 + $0x1], 0 }
   0x2   :  { %10 = vsyncpa [#allocation10], 0 }
   0x3   :  { %12 = vsyncpa [#allocation10 + $0x1], 0 }
   0x4   :  { %13 = vsyncpa [#allocation8], 0 }
   0x5   :  { %15 = vsyncpa [#allocation8 + $0x1], 0  ;;  %s851_s9 = smov 0   ;;  %s853_s10 = smov 0  }
   0x6   :  { %s855_s11 = smov 0   ;;  %s857_s12 = smov 0  }
   0x7   :  { %s859_s13 = smov 0   ;;  %s861_s14 = smov 0  }
   0x8 LB: > { %s578_s15 = sadd.s32 4294967295, %s828_s14   ;;  %s579_s16 = sadd.s32 4294967294, %s828_s14   ;;  %s828_s14 = sphi %s861_s14, %s21_s14   ;;  %s824_s13 = sphi %s859_s13, %s1176_s13   ;;  %s820_s12 = sphi %s857_s12, %s1175_s12   ;;  %s816_s11 = sphi %s855_s11, %s1174_s11   ;;  %s812_s10 = sphi %s853_s10, %s1173_s10   ;;  %s808_s9 = sphi %s851_s9, %s1172_s9  }
   0x9   : > { %s33_s17 = sadd.s32 1, %s824_s13  ;;  %s42_s18 = sadd.s32 1, %s816_s11 }
   0xa   : > { %p35_p0 = scmp.ge.s32.totalorder %s33_s17, 2  ;;  %p49_p1 = scmp.ne.s32.totalorder %s816_s11, %s812_s10 }
   0xb   : > { %p50_p2 = scmp.eq.s32.totalorder %s828_s14, 0  ;;  %p55_p3 = scmp.ne.s32.totalorder %s812_s10, %s808_s9 }
   0xc   : > { %s1178_s17 = smov (%p35_p0, %s33_s17), 0  ;;  %p56_p5 = scmp.eq.s32.totalorder %s578_s15, 0 }
   0xd   : > { %p892_p4 = por %p50_p2, %p49_p1  ;;  %s37_s20 = ssub.s32 %s824_s13, %s1178_s17 }
   0xe   : > { %p107_p6 = scmp.eq.s32.totalorder %s578_s15, 1  ;;  %p40_p7 = scmp.eq.s32.totalorder %s37_s20, 0 }
   0xf   : > { %p898_p8 = por %p56_p5, %p55_p3  ;;  %p113_p10 = scmp.eq.s32.totalorder %s579_s16, 1 }
  0x10   : > { %p902_p9 = por %p107_p6, %p49_p1  ;;  %p615_p13 = scmp.lt.s32.totalorder %s828_s14, 2 }
  0x11   : > { %s1161_s21 = scalar_select %p898_p8, 1, 0 }
  0x12   : > { %s1162_s22 = scalar_select %p902_p9, 1, 0 }
  0x13   : > { %s907_s23 = scalar_select %p40_p7, %s816_s11, %s42_s18  }
  0x14   : > { %p909_p11 = por %p113_p10, %p55_p3  ;;  %s916_s25 = sand.u32 1, %s816_s11  }
  0x15   : > { %s582_s26 = sshll.u32 %s916_s25, 3  ;;  %s597_s27 = sshll.u32 %s824_s13, 7 }
  0x16   : > { %s1163_s24 = scalar_select %p909_p11, 1, 0 }
  0x17   : > { %s923_s30 = scalar_lea.hbm %s1155_s0, %s597_s27  ;;  %s137_s3 = scalar_lea.vmem [#allocation6], %s582_s26 }
  0x18   : > { %s145_s4 = sshll.u32 %s137_s3, 4  ;;  %p929_p0 = pnand %p615_p13, %p892_p4  ;;  %s925_s4 = int_to_ptr.vmem [resolvable:$true] %s145_s4 }
  0x19   : > { %s134_s6 = scalar_lea.sflag [#allocation7], %s916_s25  ;;  %s682_s7 = scalar_lea.hbm %s923_s30, 128 }
  0x1a   : > { %p683_p2 = scmp.ne.s32.totalorder %s923_s30, %s682_s7  ;;  %p684_p3 = pneg %p929_p0 }
  0x1b   : > { %s687_s16 = scalar_lea.hbm %s1155_s0, 256  ;;  %p688_p4 = scmp.lt.u32.totalorder %s923_s30, %s1155_s0 }
  0x1c   : > { %p685_p5 = pnand %p684_p3, %p683_p2  ;;  %p689_p7 = scmp.lt.u32.totalorder %s687_s16, %s682_s7 }
  0x1d   : > { %p691_p13 = scmp.lt.u32.totalorder %s682_s7, %s923_s30 }
  0x1e   : > { %p686_p6 = pneg %p685_p5  ;;  %p690_p10 = por %p689_p7, %p688_p4 }
  0x20   : > { %p692_p12 = por %p691_p13, %p690_p10 }
  0x22   : > { %p693_p1 = pnand %p692_p12, %p686_p6 }
  0x24   : > { %696 = shalt.err (!%p693_p1)
}
  0x25   : > { %s697_s20 = scalar_lea.vmem %s925_s4, 128  ;;  %s830_s26 = smov [#allocation6]  }
  0x26   : > { %p698_p2 = scmp.ne.s32.totalorder %s925_s4, %s697_s20  ;;  %s702_s27 = sshll.u32 %s830_s26, 4  ;;  %s703_s27 = int_to_ptr.vmem [resolvable:$false] %s702_s27 }
  0x27   : > { %s704_s28 = scalar_lea.vmem %s703_s27, 256  ;;  %p705_p9 = scmp.lt.s32.totalorder %s925_s4, %s703_s27 }
  0x28   : > { %p700_p5 = pnand %p698_p2, %p684_p3  ;;  %p706_p4 = scmp.lt.s32.totalorder %s704_s28, %s697_s20 }
  0x2a   : > { %p701_p11 = pneg %p700_p5  ;;  %p707_p7 = por %p706_p4, %p705_p9 }
  0x2c   : > { %p708_p10 = pnand %p707_p7, %p701_p11 }
  0x2e   : > { %711 = shalt.err (!%p708_p10)
}
  0x2f   : > { %s831_s29 = smov 32   ;;  %s832_s3 = smov 2  }
  0x30   : > { %607 = dma.hbm_to_vmem [thread:$0]  (!%p929_p0), %s923_s30, 128, %s925_s4, %s134_s6, %s831_s29, %s831_s29, %s832_s3  }
  0x31   : > { %p172_p12 = scmp.lt.s32.totalorder %s828_s14, 3  ;;  %s585_s7 = sshll.u32 %s916_s25, 1 }
  0x32   : > { %s586_s8 = sshll.u32 %s824_s13, 5  ;;  %p1165_p9 = scmp.ge.s32.totalorder %s828_s14, 1 }
  0x33   : > { %s974_s19 = scalar_lea.hbm %s1156_s1, %s586_s8  ;;  %s159_s20 = scalar_lea.vmem [#allocation9], %s585_s7 }
  0x34   : > { %p967_p11 = pnand %p1165_p9, %p172_p12  ;;  %s167_s26 = sshll.u32 %s159_s20, 4  ;;  %s168_s26 = int_to_ptr.vmem [resolvable:$true] %s167_s26 }
  0x35   : > { %s156_s30 = scalar_lea.sflag [#allocation10], %s916_s25  ;;  %s712_s4 = scalar_lea.hbm %s974_s19, 32 }
  0x36   : > { %s1166_s15 = scalar_select %p967_p11, 1, 0 }
  0x37   : > { %p713_p1 = scmp.ne.s32.totalorder %s974_s19, %s712_s4  ;;  %s717_s28 = scalar_lea.hbm %s1156_s1, 64 }
  0x38   : > { %p718_p2 = scmp.lt.u32.totalorder %s974_s19, %s1156_s1  ;;  %p719_p5 = scmp.lt.u32.totalorder %s717_s28, %s712_s4 }
  0x39   : > { %p715_p6 = pnand %p713_p1, %p684_p3  ;;  %p721_p7 = scmp.lt.u32.totalorder %s712_s4, %s974_s19 }
  0x3a   : > { %p720_p4 = por %p719_p5, %p718_p2 }
  0x3b   : > { %p716_p13 = pneg %p715_p6 }
  0x3c   : > { %p722_p10 = por %p721_p7, %p720_p4 }
  0x3e   : > { %p723_p12 = pnand %p722_p10, %p716_p13 }
  0x40   : > { %726 = shalt.err (!%p723_p12)
}
  0x41   : > { %s727_s25 = scalar_lea.vmem %s168_s26, 32  ;;  %s833_s7 = smov [#allocation9]  }
  0x42   : > { %p728_p9 = scmp.ne.s32.totalorder %s168_s26, %s727_s25  ;;  %s732_s8 = sshll.u32 %s833_s7, 4  ;;  %s733_s8 = int_to_ptr.vmem [resolvable:$false] %s732_s8 }
  0x43   : > { %s734_s16 = scalar_lea.vmem %s733_s8, 64  ;;  %p735_p8 = scmp.lt.s32.totalorder %s168_s26, %s733_s8 }
  0x44   : > { %p730_p1 = pnand %p728_p9, %p684_p3  ;;  %p736_p11 = scmp.lt.s32.totalorder %s734_s16, %s727_s25 }
  0x46   : > { %p731_p6 = pneg %p730_p1  ;;  %p737_p2 = por %p736_p11, %p735_p8 }
  0x48   : > { %p738_p5 = pnand %p737_p2, %p731_p6 }
  0x4a   : > { %741 = shalt.err (!%p738_p5)
}
  0x4b   : > { %610 = dma.hbm_to_vmem [thread:$0]  (!%p929_p0), %s974_s19, 32, %s168_s26, %s156_s30  }
  0x4c   : > { %p1167_p13 = scmp.ne.s32.totalorder %s1166_s15, 0 }
  0x4d   : > { %s999_s18 = sand.u32 (!%p1167_p13), 1, %s812_s10   ;;  %p1168_p3 = scmp.ne.s32.totalorder (!%p1167_p13), %s1161_s21, 0 }
  0x4e   : > { %176 = sbr.rel (%p1167_p13) target bundleno = 355 (0x163), region = 28  ;;  %s588_s20 = sshll.u32 (!%p1167_p13), %s999_s18, 3 }
  0x4f   : > { %s179_s4 = scalar_lea.sflag (!%p1167_p13), [#allocation7], %s999_s18  ;;  %s182_s6 = scalar_lea.vmem (!%p1167_p13), [#allocation6], %s588_s20 }
  0x55   : > { %795 = dma.done.wait (%p1168_p3), %s179_s4, 128  }
  0x56   : > { %797 = vsyncadd (%p1168_p3), %s179_s4, 4294967168  ;;  %s589_s5 = sshll.u32 %s999_s18, 1  ;;  %s188_s15 = scalar_lea.sflag [#allocation10], %s999_s18 }
  0x57   : > { %s191_s19 = scalar_lea.vmem [#allocation9], %s589_s5 }
  0x58   : > { %799 = dma.done.wait (%p1168_p3), %s188_s15, 32  }
  0x59   : > { %801 = vsyncadd (%p1168_p3), %s188_s15, 4294967264  ;;  %v834_v0 = vmov 0.0   ;;  %v228_v1 = vld [vmem:[%s191_s19] sm:$0x3]  ;;  %vm241_vm0 = vcmask 1041408   ;;  %vm335_vm5 = vcmask 1041409  }
  0x5a   : > { %221 = vst [vmem:[#allocation3] sm:$0xf] %v834_v0  ;;  %220 = vst [vmem:[#allocation2] sm:$0xf] %v834_v0  ;;  %v1013_v2 = vld [vmem:[%s182_s6] sm:$0x3] }
  0x5b   : > { %222 = vst [vmem:[#allocation4] sm:$0xf] %v834_v0  ;;  %223 = vst [vmem:[#allocation5] sm:$0x1] %v834_v0  ;;  %vm229_vm1 = vcmp.eq.s32.totalorder %v228_v1, 0  ;;  %vm230_vm2 = vcmp.eq.s32.totalorder %v228_v1, 1 }
  0x5c   : > { %vm231_vm3 = vcmp.eq.s32.totalorder %v228_v1, 2  ;;  %vm232_vm4 = vcmp.eq.s32.totalorder %v228_v1, 3  ;;  %v1015_v3 = vld [vmem:[%s182_s6 + $0x2] sm:$0x3]  ;;  %v1017_v4 = vsel %vm229_vm1, 1.0, %v834_v0  ;;  %v1019_v5 = vsel %vm230_vm2, 1.0, %v834_v0 }
  0x5d   : > { %v1021_v6 = vsel %vm231_vm3, 1.0, %v834_v0  ;;  %v1023_v7 = vsel %vm232_vm4, 1.0, %v834_v0  ;;  %v1025_v8 = vld [vmem:[%s182_s6 + $0x4] sm:$0x3]  ;;  %v345_v9 = vsel %vm241_vm0, %v1017_v4, 0.0  ;;  %v352_v10 = vsel %vm241_vm0, %v1019_v5, 0.0 }
  0x5e   : > { %v359_v11 = vsel %vm241_vm0, %v1021_v6, 0.0  ;;  %v366_v12 = vsel %vm241_vm0, %v1023_v7, 0.0  ;;  %v1035_v13 = vld [vmem:[%s182_s6 + $0x6] sm:$0x3]  ;;  %v346_v14 = vrot.slane %v345_v9, 4  ;;  %v353_v15 = vrot.slane %v352_v10, 4 }
  0x5f   : > { %v360_v16 = vrot.slane %v359_v11, 4  ;;  %v367_v17 = vrot.slane %v366_v12, 4  ;;  %v242_v18 = vsel %vm241_vm0, %v1013_v2, -inf  ;;  %v243_v19 = vsel %vm241_vm0, %v1015_v3, -inf  ;;  %s594_s21 = sshll.u32 %s820_s12, 4  ;;  %s215_s26 = scalar_lea.vmem [#allocation11], %s999_s18 }
  0x60   : > { %v244_v20 = vsel %vm241_vm0, %v1025_v8, -inf  ;;  %v245_v21 = vsel %vm241_vm0, %v1035_v13, -inf  ;;  %v347_v22 = vadd.f32 %v346_v14, %v345_v9  ;;  %v354_v23 = vadd.f32 %v353_v15, %v352_v10  ;;  %s478_s30 = sshll.u32 %s215_s26, 4  ;;  %s1106_s29 = scalar_lea.hbm %s1157_s2, %s594_s21  ;;  %s1108_s30 = int_to_ptr.vmem [resolvable:$true] %s478_s30 }
  0x61   : > { %v361_v24 = vadd.f32 %v360_v16, %v359_v11  ;;  %v368_v25 = vadd.f32 %v367_v17, %v366_v12  ;;  %v246_v26 = vmax.f32 %v242_v18, %v243_v19  ;;  %v247_v27 = vmax.f32 %v244_v20, %v245_v21  ;;  %v344_v53 = vld [vmem:[#allocation3] sm:$0xf]  ;;  %s466_s3 = scalar_lea.sflag [#allocation8], %s999_s18  ;;  %s742_s25 = scalar_lea.vmem %s1108_s30, 16 }
  0x62   : > { %v348_v28 = vrot.slane %v347_v22, 2  ;;  %v355_v29 = vrot.slane %v354_v23, 2  ;;  %vm337_vm6 = vcmask 1042434   ;;  %vm339_vm7 = vcmask 1043459   ;;  %p743_p8 = scmp.ne.s32.totalorder %s1108_s30, %s742_s25  ;;  %p1169_p0 = scmp.ne.s32.totalorder %s1162_s22, 0 }
  0x63   : > { %v362_v30 = vrot.slane %v361_v24, 2  ;;  %v369_v31 = vrot.slane %v368_v25, 2  ;;  %v1045_v32 = vmax.f32 %v246_v26, %v247_v27  ;;  %vm426_vm8 = vcmask 1043456   ;;  %s835_s12 = smov [#allocation11]  }
  0x64   : > { %v349_v33 = vadd.f32 %v348_v28, %v347_v22  ;;  %v356_v34 = vadd.f32 %v355_v29, %v354_v23  ;;  %v273_v14 = vmul.f32 %v1017_v4, %v1013_v2  ;;  %v274_v15 = vmul.f32 %v1019_v5, %v1015_v3  ;;  %p744_p11 = pnand %p743_p8, %p1169_p0  ;;  %s746_s7 = sshll.u32 %s835_s12, 4  ;;  %s747_s7 = int_to_ptr.vmem [resolvable:$false] %s746_s7 }
  0x65   : > { %v363_v35 = vadd.f32 %v362_v30, %v361_v24  ;;  %v370_v36 = vadd.f32 %v369_v31, %v368_v25  ;;  %v249_v37 = vsub.f32 %v1013_v2, %v1045_v32  ;;  %v250_v38 = vsub.f32 %v1015_v3, %v1045_v32  ;;  %s748_s8 = scalar_lea.vmem %s747_s7, 32  ;;  %p749_p7 = scmp.lt.s32.totalorder %s1108_s30, %s747_s7 }
  0x66   : > { %v251_v39 = vsub.f32 %v1025_v8, %v1045_v32  ;;  %v252_v40 = vsub.f32 %v1035_v13, %v1045_v32  ;;  %v350_v41 = vrot.slane %v349_v33, 1  ;;  %v357_v42 = vrot.slane %v356_v34, 1  ;;  %p745_p4 = pneg %p744_p11  ;;  %p750_p10 = scmp.lt.s32.totalorder %s748_s8, %s742_s25 }
  0x67   : > { %v364_v43 = vrot.slane %v363_v35, 1  ;;  %v371_v44 = vrot.slane %v370_v36, 1  ;;  %v253_v45 = vmul.f32 1.442695, %v249_v37  ;;  %v255_v46 = vmul.f32 1.442695, %v250_v38 }
  0x68   : > { %v257_v47 = vmul.f32 1.442695, %v251_v39  ;;  %v351_v48 = vadd.f32 %v350_v41, %v349_v33  ;;  %v358_v49 = vadd.f32 %v357_v42, %v356_v34  ;;  %v259_v52 = vmul.f32 1.442695, %v252_v40  ;;  %p751_p12 = por %p750_p10, %p749_p7 }
  0x69   : > { %v365_v50 = vadd.f32 %v364_v43, %v363_v35  ;;  %v372_v51 = vadd.f32 %v371_v44, %v370_v36  ;;  %668 = vpow2.f32 %v253_v45  ;;  %v275_v17 = vmul.f32 %v1021_v6, %v1025_v8 }
  0x6a   : > { %v377_v54 = vsel %vm335_vm5, %v358_v49, %v351_v48  ;;  %670 = vpow2.f32 %v255_v46  ;;  %v277_v18 = vsel %vm241_vm0, %v273_v14, 0.0  ;;  %v278_v19 = vsel %vm241_vm0, %v274_v15, 0.0  ;;  %p752_p9 = pnand %p751_p12, %p745_p4 }
  0x6b   : > { %v378_v55 = vsel %vm337_vm6, %v365_v50, %v377_v54  ;;  %672 = vpow2.f32 %v257_v47  ;;  %v279_v20 = vadd.f32 %v278_v19, %v277_v18  ;;  %v276_v21 = vmul.f32 %v1023_v7, %v1035_v13 }
  0x6c   : > { %v379_v56 = vsel %vm339_vm7, %v372_v51, %v378_v55  ;;  %674 = vpow2.f32 %v259_v52  ;;  %v280_v22 = vsel %vm241_vm0, %v275_v17, 0.0  ;;  %vm453_vm9 = vcmask 1040384  }
  0x6d   : > { %v381_v57 = vadd.f32 %v379_v56, %v344_v53  ;;  %v281_v2 = vadd.f32 %v280_v22, %v279_v20  ;;  %v282_v23 = vsel %vm241_vm0, %v276_v21, 0.0  ;;  %v383_v22 = vld [vmem:[#allocation4] sm:$0xf] }
  0x6f   : > { %382 = vst [vmem:[#allocation3] sm:$0xf] %v381_v57  ;;  %v1075_v28 = vadd.f32 %v282_v23, %v281_v2 }
  0x73   : > { %v669_v58 = vpop.eup %668 }
  0x74   : > { %v671_v59 = vpop.eup %670  ;;  %v261_v60 = vsel %vm241_vm0, %v669_v58, 0.0 }
  0x75   : > { %v673_v61 = vpop.eup %672  ;;  %v262_v62 = vsel %vm241_vm0, %v671_v59, 0.0 }
  0x76   : > { %v675_v63 = vpop.eup %674  ;;  %v430_v0 = vld [vmem:[#allocation3] sm:$0xf]  ;;  %v263_v1 = vadd.f32 %v262_v62, %v261_v60  ;;  %v264_v9 = vsel %vm241_vm0, %v673_v61, 0.0 }
  0x77   : > { %v431_v10 = vsel %vm426_vm8, %v430_v0, 0.0  ;;  %v266_v11 = vsel %vm241_vm0, %v675_v63, 0.0 }
  0x78   : > { %432 = vadd.xlane.f32.xlu0 %v431_v10  ;;  %v265_v12 = vadd.f32 %v264_v9, %v263_v1 }
  0x7a   : > { %v267_v16 = vadd.f32 %v266_v11, %v265_v12 }
  0x7c   : > { %676 = vrcp.f32 %v267_v16 }
  0x7d   : > { %678 = vlog2.f32 %v267_v16 }
  0x86   : > { %v677_v3 = vpop.eup %676 }
  0x87   : > { %v679_v24 = vpop.eup %678  ;;  %v269_v25 = vmul.f32 %v677_v3, %v669_v58  ;;  %v270_v26 = vmul.f32 %v677_v3, %v671_v59  ;;  %v271_v27 = vmul.f32 %v677_v3, %v673_v61  ;;  %v272_v8 = vmul.f32 %v677_v3, %v675_v63 }
  0x88   : > { %v285_v29 = vmul.f32 0.6931472, %v679_v24 }
  0x89   : > { %v384_v30 = vsel %vm241_vm0, %v269_v25, 0.0  ;;  %v391_v31 = vsel %vm241_vm0, %v270_v26, 0.0  ;;  %v398_v13 = vsel %vm241_vm0, %v271_v27, 0.0  ;;  %v405_v33 = vsel %vm241_vm0, %v272_v8, 0.0 }
  0x8a   : > { %v385_v34 = vrot.slane %v384_v30, 4  ;;  %v392_v35 = vrot.slane %v391_v31, 4  ;;  %v399_v36 = vrot.slane %v398_v13, 4  ;;  %v406_v37 = vrot.slane %v405_v33, 4 }
  0x8b   : > { %v299_v38 = vmul.f32 %v1017_v4, %v269_v25  ;;  %v300_v39 = vmul.f32 %v1019_v5, %v270_v26  ;;  %v301_v40 = vmul.f32 %v1021_v6, %v271_v27  ;;  %v302_v41 = vmul.f32 %v1023_v7, %v272_v8 }
  0x8c   : > { %v386_v42 = vadd.f32 %v385_v34, %v384_v30  ;;  %v393_v43 = vadd.f32 %v392_v35, %v391_v31  ;;  %v400_v44 = vadd.f32 %v399_v36, %v398_v13  ;;  %v407_v45 = vadd.f32 %v406_v37, %v405_v33  ;;  %v298_v37 = vld [vmem:[#allocation2] sm:$0xf] }
  0x8d   : > { %v303_v46 = vsel %vm241_vm0, %v299_v38, 0.0  ;;  %v310_v47 = vsel %vm241_vm0, %v300_v39, 0.0  ;;  %v317_v48 = vsel %vm241_vm0, %v301_v40, 0.0  ;;  %v324_v49 = vsel %vm241_vm0, %v302_v41, 0.0 }
  0x8e   : > { %v387_v50 = vrot.slane %v386_v42, 2  ;;  %v394_v4 = vrot.slane %v393_v43, 2  ;;  %v401_v51 = vrot.slane %v400_v44, 2  ;;  %v408_v5 = vrot.slane %v407_v45, 2 }
  0x8f   : > { %v304_v52 = vrot.slane %v303_v46, 4  ;;  %v311_v6 = vrot.slane %v310_v47, 4  ;;  %v318_v53 = vrot.slane %v317_v48, 4  ;;  %v325_v7 = vrot.slane %v324_v49, 4 }
  0x90   : > { %v388_v54 = vadd.f32 %v387_v50, %v386_v42  ;;  %v395_v55 = vadd.f32 %v394_v4, %v393_v43  ;;  %v402_v56 = vadd.f32 %v401_v51, %v400_v44  ;;  %v409_v57 = vadd.f32 %v408_v5, %v407_v45 }
  0x91   : > { %v305_v58 = vadd.f32 %v304_v52, %v303_v46  ;;  %v312_v59 = vadd.f32 %v311_v6, %v310_v47  ;;  %v319_v60 = vadd.f32 %v318_v53, %v317_v48  ;;  %v326_v61 = vadd.f32 %v325_v7, %v324_v49  ;;  %v288_v46 = vld [vmem:[#allocation5] sm:$0x1] }
  0x92   : > { %v389_v62 = vrot.slane %v388_v54, 1  ;;  %v396_v63 = vrot.slane %v395_v55, 1  ;;  %v403_v0 = vrot.slane %v402_v56, 1  ;;  %v410_v1 = vrot.slane %v409_v57, 1 }
  0x93   : > { %v306_v9 = vrot.slane %v305_v58, 2  ;;  %v313_v10 = vrot.slane %v312_v59, 2  ;;  %v320_v11 = vrot.slane %v319_v60, 2  ;;  %v327_v12 = vrot.slane %v326_v61, 2 }
  0x94   : > { %v390_v14 = vadd.f32 %v389_v62, %v388_v54  ;;  %v397_v15 = vadd.f32 %v396_v63, %v395_v55  ;;  %v404_v16 = vadd.f32 %v403_v0, %v402_v56  ;;  %v411_v17 = vadd.f32 %v410_v1, %v409_v57 }
  0x95   : > { %v307_v18 = vadd.f32 %v306_v9, %v305_v58  ;;  %v314_v19 = vadd.f32 %v313_v10, %v312_v59  ;;  %v321_v20 = vadd.f32 %v320_v11, %v319_v60  ;;  %v328_v21 = vadd.f32 %v327_v12, %v326_v61 }
  0x96   : > { %v416_v2 = vsel %vm335_vm5, %v397_v15, %v390_v14  ;;  %v286_v23 = vadd.f32 %v285_v29, %v1045_v32  ;;  %v457_v60 = vlaneseq }
  0x97   : > { %v417_v3 = vsel %vm337_vm6, %v404_v16, %v416_v2  ;;  %v308_v24 = vrot.slane %v307_v18, 1  ;;  %v315_v25 = vrot.slane %v314_v19, 1  ;;  %v322_v26 = vrot.slane %v321_v20, 1 }
  0x98   : > { %v418_v27 = vsel %vm339_vm7, %v411_v17, %v417_v3  ;;  %v329_v8 = vrot.slane %v328_v21, 1  ;;  %v287_v30 = vsub.f32 %v286_v23, %v1075_v28  ;;  %v458_v63 = vand.u32 127, %v457_v60 }
  0x99   : > { %v420_v31 = vadd.f32 %v418_v27, %v383_v22  ;;  %v309_v13 = vadd.f32 %v308_v24, %v307_v18  ;;  %v316_v33 = vadd.f32 %v315_v25, %v314_v19  ;;  %v323_v34 = vadd.f32 %v322_v26, %v321_v20 }
  0x9a   : > { %v330_v35 = vadd.f32 %v329_v8, %v328_v21  ;;  %v289_v36 = vsel %vm241_vm0, %v287_v30, 0.0  ;;  %vm461_vm10 = vcmp.eq.s32.totalorder %v458_v63, 1  ;;  %vm459_vm11 = vcmp.eq.s32.totalorder %v458_v63, 0 }
  0x9b   : > { %421 = vst [vmem:[#allocation4] sm:$0xf] %v420_v31  ;;  %v336_v32 = vsel %vm335_vm5, %v316_v33, %v309_v13  ;;  %v290_v29 = vrot.slane %v289_v36, 4 }
  0x9c   : > { %v338_v38 = vsel %vm337_vm6, %v323_v34, %v336_v32 }
  0x9d   : > { %v340_v39 = vsel %vm339_vm7, %v330_v35, %v338_v38  ;;  %v291_v40 = vadd.f32 %v290_v29, %v289_v36 }
  0x9e   : > { %v342_v41 = vadd.f32 %v340_v39, %v298_v37 }
  0x9f   : > { %v292_v42 = vrot.slane %v291_v40, 2 }
  0xa0   : > { %343 = vst [vmem:[#allocation2] sm:$0xf] %v342_v41 }
  0xa1   : > { %v293_v28 = vadd.f32 %v292_v42, %v291_v40 }
  0xa2   : > { %v434_v43 = vld [vmem:[#allocation4] sm:$0xf] }
  0xa3   : > { %v435_v44 = vsel %vm426_vm8, %v434_v43, 0.0  ;;  %v294_v45 = vrot.slane %v293_v28, 1 }
  0xa4   : > { %436 = vadd.xlane.f32.xlu0 %v435_v44 }
  0xa5   : > { %v295_v47 = vadd.f32 %v294_v45, %v293_v28 }
  0xa7   : > { %v425_v48 = vld [vmem:[#allocation2] sm:$0xf]  ;;  %v296_v49 = vadd.f32 %v295_v47, %v288_v46 }
  0xa8   : > { %v427_v50 = vsel %vm426_vm8, %v425_v48, 0.0 }
  0xa9   : > { %428 = vadd.xlane.f32.xlu1 %v427_v50  ;;  %297 = vst [vmem:[#allocation5] sm:$0x1] %v296_v49 }
  0xb0   : > { %v452_v4 = vld [vmem:[#allocation5] sm:$0x1] }
  0xb1   : > { %v454_v51 = vsel %vm453_vm9, %v452_v4, 0.0 }
  0xb2   : > { %455 = vadd.xlane.f32.xlu1 %v454_v51 }
 0x105   : > { %v433_v5 = vpop.xlane.xlu0 %432 }
 0x131   : > { %v437_v52 = vpop.xlane.xlu0 %436 }
 0x132   : > { %v440_v6 = vadd.f32 %v437_v52, %v433_v5 }
 0x134   : > { %v441_v53 = vadd.f32 1e-05, %v440_v6 }
 0x136   : > { %680 = vrcp.f32 %v441_v53  ;;  %v429_v7 = vpop.xlane.xlu1 %428 }
 0x137   : > { %v438_v54 = vmul.f32 2.0, %v429_v7 }
 0x139   : > { %v439_v55 = vadd.f32 1e-05, %v438_v54 }
 0x13f   : > { %v456_v9 = vpop.xlane.xlu1 %455 }
 0x140   : > { %v681_v56 = vpop.eup %680  ;;  %v462_v12 = vsel %vm461_vm10, %v456_v9, 0.0 }
 0x141   : > { %v443_v57 = vmul.f32 %v681_v56, %v439_v55 }
 0x143   : > { %v444_v58 = vsub.f32 1.0, %v443_v57 }
 0x145   : > { %v445_v59 = vsel %vm426_vm8, %v444_v58, 0.0 }
 0x146   : > { %v446_v61 = vrot.slane %v445_v59, 4 }
 0x148   : > { %v447_v62 = vadd.f32 %v446_v61, %v445_v59 }
 0x14a   : > { %v448_v0 = vrot.slane %v447_v62, 2 }
 0x14c   : > { %v449_v1 = vadd.f32 %v448_v0, %v447_v62 }
 0x14e   : > { %v450_v10 = vrot.slane %v449_v1, 1 }
 0x150   : > { %v451_v11 = vadd.f32 %v450_v10, %v449_v1 }
 0x152   : > { %v460_v14 = vsel %vm459_vm11, %v451_v11, 0.0 }
 0x153   : > { %v463_v15 = vadd.f32 %v462_v12, %v460_v14 }
 0x155   : > { %464 = vst [vmem:[%s215_s26] sm:$0x1] %v463_v15 }
 0x156   : > { %755 = shalt.err (!%p752_p9)
}
 0x157   : > { %s756_s16 = scalar_lea.hbm %s1106_s29, 16  ;;  %s760_s4 = scalar_lea.hbm %s1157_s2, 32 }
 0x158   : > { %p757_p1 = scmp.ne.s32.totalorder %s1106_s29, %s756_s16  ;;  %p761_p5 = scmp.lt.u32.totalorder %s1106_s29, %s1157_s2 }
 0x159   : > { %p762_p13 = scmp.lt.u32.totalorder %s760_s4, %s756_s16  ;;  %p764_p8 = scmp.lt.u32.totalorder %s756_s16, %s1106_s29 }
 0x15a   : > { %p758_p6 = pnand %p757_p1, %p1169_p0 }
 0x15b   : > { %p763_p3 = por %p762_p13, %p761_p5 }
 0x15c   : > { %p759_p2 = pneg %p758_p6 }
 0x15d   : > { %p765_p11 = por %p764_p8, %p763_p3 }
 0x15f   : > { %p766_p4 = pnand %p765_p11, %p759_p2 }
 0x161   : > { %769 = shalt.err (!%p766_p4)
}
 0x162   : > { %602 = dma.vmem_to_hbm [thread:$0]  (%p1169_p0), %s1108_s30, 16, %s1106_s29, %s466_s3  }
 0x163 PF: > { %s490_s15 = sand.u32 1, %s808_s9   ;;  %p1170_p7 = scmp.ne.s32.totalorder %s1163_s24, 0 }
 0x164   : > { %p1171_p10 = scmp.ge.s32.totalorder %s828_s14, 2  ;;  %s491_s19 = scalar_lea.sflag [#allocation8], %s490_s15 }
 0x166   : > { %p612_p12 = pnand %p1171_p10, %p1170_p7 }
 0x168   : > { %803 = dma.done.wait (!%p612_p12), %s491_s19, 16  }
 0x169   : > { %805 = vsyncadd (!%p612_p12), %s491_s19, 4294967280  ;;  %s21_s14 = sadd.s32 1, %s828_s14   ;;  %s1172_s9 = smov %s812_s10 }
 0x16a   : > { %p18_p9 = scmp.ge.s32.totalorder %s21_s14, 4   ;;  %s1173_s10 = smov %s816_s11 }
 0x16b   : > { %s1174_s11 = smov %s907_s23  ;;  %s1175_s12 = smov %s824_s13 }
 0x16c   : > { %s1176_s13 = smov %s1178_s17  ;;  %20 = sbr.rel (!%p18_p9) target bundleno = 8 (0x8), region = 94 }
 0x173   :  { %495 = vsyncpa [#allocation7], 1 }
 0x174   :  { %497 = vsyncpa [#allocation7 + $0x1], 1 }
 0x175   :  { %498 = vsyncpa [#allocation10], 1 }
 0x176   :  { %500 = vsyncpa [#allocation10 + $0x1], 1 }
 0x177   :  { %501 = vsyncpa [#allocation8], 1 }
 0x178   :  { %503 = vsyncpa [#allocation8 + $0x1], 1 }

</bundles_post_ra>
